<compile_context>
chip_gen: v6e
topology: v6e:2x2x1
jax: 0.10.0
libtpu: 0.0.40
codegen_flags: <defaults>
</compile_context>

<pallas_src>
import functools

import jax
import jax.numpy as jnp
from jax.experimental import pallas as pl
from jax.experimental.pallas import tpu as pltpu


def _round_up(x, m):
    return (x + m - 1) // m * m


def _lstm_regressor_kernel(x_ref, w_ih_ref, w_hh_ref, b_ref,
                           w_reg_ref, b_reg_ref, out_ref,
                           x_proj_ref, h_hist_ref, *, T, Bp, out_chunk):
    """One grid step = full recurrence + this step's output-lane block.

    Shapes (resident in VMEM):
      x_ref:      (T*Bp, D)   compute dtype   time-major features, batch padded
      w_ih_ref:   (D, 4H)     compute dtype
      w_hh_ref:   (H, 4H)     compute dtype
      b_ref:      (1, 4H)     f32             b_ih + b_hh
      w_reg_ref:  (H, OpB)    compute dtype   this block's output lanes (zero-padded)
      b_reg_ref:  (1, OpB)    f32
      out_ref:    (T*Bp, OpB) f32             lane-dense flat output slab
      x_proj_ref: (T*Bp, 4H)  f32 scratch     precomputed x @ W_ih + b
      h_hist_ref: (T*Bp, H)   f32 scratch     per-step hidden states
    """
    H = h_hist_ref.shape[-1]
    G = 4 * H
    cdt = w_hh_ref.dtype

    # (1) Input projection for ALL timesteps in one well-shaped MXU call; bias
    #     folded in here so the time loop carries no bias broadcast at all.
    x_proj_ref[...] = (
        jnp.dot(x_ref[...], w_ih_ref[...], preferred_element_type=jnp.float32)
        + b_ref[...])

    w_hh = w_hh_ref[...]

    # Lane mask selecting the g-gate columns (PyTorch gate order [i, f, g, o]).
    lane = jax.lax.broadcasted_iota(jnp.int32, (Bp, G), 1)
    g_mask = jnp.logical_and(lane >= 2 * H, lane < 3 * H)

    def step(t, carry):
        h, c = carry                                       # (Bp, H) f32 each
        row = pl.multiple_of(t * Bp, Bp)
        gates = (x_proj_ref[pl.ds(row, Bp), :]
                 + jnp.dot(h.astype(cdt), w_hh,
                           preferred_element_type=jnp.float32))   # (Bp, 4H) f32
        # Single full-vreg transcendental: sigmoid(x) = 0.5*(1 + tanh(x/2)).
        th = jnp.tanh(jnp.where(g_mask, gates, 0.5 * gates))
        act = jnp.where(g_mask, th, 0.5 * th + 0.5)
        i_g = act[:, 0 * H:1 * H]
        f_g = act[:, 1 * H:2 * H]
        g_g = act[:, 2 * H:3 * H]
        o_g = act[:, 3 * H:4 * H]
        c_new = f_g * c + i_g * g_g
        h_new = o_g * jnp.tanh(c_new)
        h_hist_ref[pl.ds(row, Bp), :] = h_new
        return h_new, c_new

    h0 = jnp.zeros((Bp, H), jnp.float32)
    c0 = jnp.zeros((Bp, H), jnp.float32)
    jax.lax.fori_loop(0, T, step, (h0, c0), unroll=min(T, 8))

    # (2) Hoisted regressor, chunked over output lanes to bound vreg pressure:
    #     MXU results stream chunk-by-chunk to 128-lane-aligned unmasked stores.
    h_all = h_hist_ref[...].astype(cdt)                    # (T*Bp, H)
    n_chunks = out_ref.shape[-1] // out_chunk

    @pl.loop(0, n_chunks)
    def _(jc):
        off = pl.multiple_of(jc * out_chunk, out_chunk)
        out_ref[:, pl.ds(off, out_chunk)] = (
            jnp.dot(h_all, w_reg_ref[:, pl.ds(off, out_chunk)],
                    preferred_element_type=jnp.float32)
            + b_reg_ref[:, pl.ds(off, out_chunk)])


def ozone_predictor_pallas(feats, w_ih, w_hh, b, w_reg, b_reg,
                           *, compute_dtype=jnp.bfloat16, op_blocks=1):
    """feats: (B, T, D) f32. Weights stored transposed for right-mult (x @ W).

    Returns (B, T, output_dim) f32, matching nn.LSTM(batch_first) + nn.Linear.
    `compute_dtype` sets MXU operand precision (accumulation is always f32).
    `op_blocks` > 1 adds a 'parallel' grid axis over output-lane blocks
    (uses both TensorCores on v7x; the tiny recurrence is recomputed per block).
    """
    B, T, D = feats.shape
    H = w_hh.shape[0]
    G = 4 * H
    O = w_reg.shape[1]

    # Wrapper-side layout plumbing: batch padded to the sublane width, output
    # lanes padded so each grid block is a 128 multiple (unmasked stores).
    Bp = _round_up(B, 8)
    Op_block = _round_up(pl.cdiv(_round_up(O, 128), op_blocks), 128)
    Op = Op_block * op_blocks
    out_chunk = 256 if Op_block % 256 == 0 else 128

    feats_tm = jnp.transpose(feats, (1, 0, 2))                     # (T, B, D)
    feats_tm = jnp.pad(feats_tm, ((0, 0), (0, Bp - B), (0, 0)))
    feats_2d = feats_tm.reshape(T * Bp, D).astype(compute_dtype)   # (T*Bp, D)

    w_ih_c = w_ih.astype(compute_dtype)                            # (D, 4H)
    w_hh_c = w_hh.astype(compute_dtype)                            # (H, 4H)
    b_c = b.reshape(1, G).astype(jnp.float32)                      # (1, 4H)
    w_reg_c = jnp.pad(w_reg, ((0, 0), (0, Op - O))).astype(compute_dtype)
    b_reg_c = jnp.pad(b_reg.reshape(1, O),
                      ((0, 0), (0, Op - O))).astype(jnp.float32)

    kernel = functools.partial(_lstm_regressor_kernel,
                               T=T, Bp=Bp, out_chunk=out_chunk)

    grid_spec = pltpu.PrefetchScalarGridSpec(
        num_scalar_prefetch=0,
        grid=(op_blocks,),
        in_specs=[
            pl.BlockSpec((T * Bp, D), lambda j: (0, 0)),        # feats (full)
            pl.BlockSpec((D, G), lambda j: (0, 0)),             # W_ih  (full)
            pl.BlockSpec((H, G), lambda j: (0, 0)),             # W_hh  (full)
            pl.BlockSpec((1, G), lambda j: (0, 0)),             # bias  (full)
            pl.BlockSpec((H, Op_block), lambda j: (0, j)),      # W_reg block
            pl.BlockSpec((1, Op_block), lambda j: (0, j)),      # b_reg block
        ],
        out_specs=pl.BlockSpec((T * Bp, Op_block), lambda j: (0, j)),
        scratch_shapes=[
            pltpu.VMEM((T * Bp, G), jnp.float32),               # x @ W_ih + b
            pltpu.VMEM((T * Bp, H), jnp.float32),               # hidden history
        ],
    )

    out_2d = pl.pallas_call(
        kernel,
        out_shape=jax.ShapeDtypeStruct((T * Bp, Op), jnp.float32),
        grid_spec=grid_spec,
        compiler_params=pltpu.CompilerParams(
            dimension_semantics=("parallel",),
            vmem_limit_bytes=32 * 1024 * 1024),
    )(feats_2d, w_ih_c, w_hh_c, b_c, w_reg_c, b_reg_c)

    # Slice off batch/output padding, back to batch-first.
    out_tm = out_2d.reshape(T, Bp, Op)[:, :B, :O]                  # (T, B, O)
    return jnp.transpose(out_tm, (1, 0, 2))                        # (B, T, O)


def ozone_predictor_ref(feats, w_ih, w_hh, b, w_reg, b_reg):
    """Pure-JAX f32 reference (matches PyTorch nn.LSTM + nn.Linear semantics)."""
    B, T, D = feats.shape
    H = w_hh.shape[0]

    def step(carry, x_t):
        h, c = carry
        gates = x_t @ w_ih + h @ w_hh + b
        i_g, f_g, g_g, o_g = jnp.split(gates, 4, axis=-1)
        i_g = jax.nn.sigmoid(i_g)
        f_g = jax.nn.sigmoid(f_g)
        g_g = jnp.tanh(g_g)
        o_g = jax.nn.sigmoid(o_g)
        c = f_g * c + i_g * g_g
        h = o_g * jnp.tanh(c)
        return (h, c), h @ w_reg + b_reg

    init = (jnp.zeros((B, H), jnp.float32), jnp.zeros((B, H), jnp.float32))
    _, outs = jax.lax.scan(step, init, jnp.swapaxes(feats, 0, 1))
    return jnp.swapaxes(outs, 0, 1)


if __name__ == "__main__":
    # Small shapes consistent with the module:
    #   cnn_out_dim=32 -> LSTM input_dim = cnn_out_dim*4 = 128
    #   lstm_hidden_dim=32, output_dim=849 (module default)
    B, T = 2, 8
    cnn_out_dim = 32
    D = cnn_out_dim * 4          # 128
    H = 32                       # lstm_hidden_dim
    O = 849                      # output_dim

    key = jax.random.PRNGKey(0)
    k_feat, k_wih, k_whh, k_bih, k_bhh, k_wreg, k_breg = jax.random.split(key, 7)

    # Deterministic synthetic parameters (PyTorch-shaped, stored transposed
    # for right-multiplication: x @ W).
    scale = 1.0 / jnp.sqrt(H).astype(jnp.float32)
    feats = jax.random.normal(k_feat, (B, T, D), jnp.float32)
    w_ih = jax.random.uniform(k_wih, (D, 4 * H), jnp.float32, -scale, scale)
    w_hh = jax.random.uniform(k_whh, (H, 4 * H), jnp.float32, -scale, scale)
    b_ih = jax.random.uniform(k_bih, (1, 4 * H), jnp.float32, -scale, scale)
    b_hh = jax.random.uniform(k_bhh, (1, 4 * H), jnp.float32, -scale, scale)
    b = b_ih + b_hh
    w_reg = jax.random.uniform(k_wreg, (H, O), jnp.float32, -scale, scale)
    b_reg = jax.random.uniform(k_breg, (1, O), jnp.float32, -scale, scale)

    ref = ozone_predictor_ref(feats, w_ih, w_hh, b, w_reg, b_reg)

    # Exact-precision path: f32 MXU operands, tight tolerance.
    out_f32 = ozone_predictor_pallas(feats, w_ih, w_hh, b, w_reg, b_reg,
                                     compute_dtype=jnp.float32)
    out_f32 = jax.block_until_ready(out_f32)
    assert out_f32.shape == (B, T, O), out_f32.shape
    assert jnp.allclose(out_f32, ref, atol=1e-4, rtol=1e-4), \
        float(jnp.max(jnp.abs(out_f32 - ref)))

    # Fast path (default): bf16 MXU operands, f32 accumulation / state.
    out_bf16 = ozone_predictor_pallas(feats, w_ih, w_hh, b, w_reg, b_reg,
                                      compute_dtype=jnp.bfloat16)
    out_bf16 = jax.block_until_ready(out_bf16)
    assert out_bf16.shape == (B, T, O), out_bf16.shape
    assert jnp.allclose(out_bf16, ref, atol=5e-2, rtol=5e-2), \
        float(jnp.max(jnp.abs(out_bf16 - ref)))

    # Output-lane-split grid (dual-TensorCore path on v7x; serial elsewhere).
    out_split = ozone_predictor_pallas(feats, w_ih, w_hh, b, w_reg, b_reg,
                                       compute_dtype=jnp.bfloat16, op_blocks=2)
    out_split = jax.block_until_ready(out_split)
    assert out_split.shape == (B, T, O), out_split.shape
    assert jnp.allclose(out_split, ref, atol=5e-2, rtol=5e-2), \
        float(jnp.max(jnp.abs(out_split - ref)))

    print("KERNEL_OK")
</pallas_src>

<mosaic_0001>
module attributes {stable_mosaic.version = 11 : i64} {
  func.func @_lstm_regressor_kernel(%arg0: i32, %arg1: memref<64x128xf32, #tpu.memory_space<vmem>>, %arg2: memref<128x128xf32, #tpu.memory_space<vmem>>, %arg3: memref<32x128xf32, #tpu.memory_space<vmem>>, %arg4: memref<1x128xf32, #tpu.memory_space<vmem>>, %arg5: memref<32x896xf32, #tpu.memory_space<vmem>>, %arg6: memref<1x896xf32, #tpu.memory_space<vmem>>, %arg7: memref<64x896xf32, #tpu.memory_space<vmem>>, %arg8: memref<64x128xf32, #tpu.memory_space<vmem>>, %arg9: memref<64x32xf32, #tpu.memory_space<vmem>>) attributes {dimension_semantics = [#tpu.dimension_semantics<parallel>], iteration_bounds = array<i64: 1>, scalar_prefetch = 0 : i64, scratch_operands = 2 : i64, tpu.core_type = #tpu.core_type<tc>, window_params = [{pipeline_mode = #tpu.pipeline_mode<synchronous>, transform_indices = @transform_0, window_bounds = array<i64: 64, 128>}, {pipeline_mode = #tpu.pipeline_mode<synchronous>, transform_indices = @transform_1, window_bounds = array<i64: 128, 128>}, {pipeline_mode = #tpu.pipeline_mode<synchronous>, transform_indices = @transform_2, window_bounds = array<i64: 32, 128>}, {pipeline_mode = #tpu.pipeline_mode<synchronous>, transform_indices = @transform_3, window_bounds = array<i64: 1, 128>}, {transform_indices = @transform_4, window_bounds = array<i64: 32, 896>}, {transform_indices = @transform_5, window_bounds = array<i64: 1, 896>}, {transform_indices = @transform_6, window_bounds = array<i64: 64, 896>}]} {
    %c0 = arith.constant 0 : index
    %c0_0 = arith.constant 0 : index
    %0 = vector.load %arg1[%c0, %c0_0] : memref<64x128xf32, #tpu.memory_space<vmem>>, vector<64x128xf32>
    %c0_1 = arith.constant 0 : index
    %c0_2 = arith.constant 0 : index
    %1 = vector.load %arg2[%c0_1, %c0_2] : memref<128x128xf32, #tpu.memory_space<vmem>>, vector<128x128xf32>
    %cst = arith.constant dense<0.000000e+00> : vector<64x128xf32>
    %2 = tpu.matmul %0, %1, %cst {dimension_numbers = #tpu.dot_dimension_numbers<[1], [0], [0], [1], [0, 0, 1, 1], [], []>} : vector<64x128xf32>, vector<128x128xf32>, vector<64x128xf32> -> vector<64x128xf32>
    %c0_3 = arith.constant 0 : index
    %c0_4 = arith.constant 0 : index
    %3 = vector.load %arg4[%c0_3, %c0_4] : memref<1x128xf32, #tpu.memory_space<vmem>>, vector<1x128xf32>
    %4 = vector.broadcast %3 : vector<1x128xf32> to vector<64x128xf32>
    %5 = arith.addf %2, %4 : vector<64x128xf32>
    %c0_5 = arith.constant 0 : index
    %c0_6 = arith.constant 0 : index
    %6 = vector.load %arg8[%c0_5, %c0_6] : memref<64x128xf32, #tpu.memory_space<vmem>>, vector<64x128xf32>
    tpu.vector_store %arg8[%c0_5, %c0_6], %5 {strides = array<i32>} : memref<64x128xf32, #tpu.memory_space<vmem>>, vector<64x128xf32>,
    %c0_7 = arith.constant 0 : index
    %c0_8 = arith.constant 0 : index
    %7 = vector.load %arg3[%c0_7, %c0_8] : memref<32x128xf32, #tpu.memory_space<vmem>>, vector<32x128xf32>
    %8 = tpu.iota {dimensions = array<i32: 1>} : vector<8x128xi32>
    %c64_i32 = arith.constant 64 : i32
    %9 = vector.broadcast %c64_i32 : i32 to vector<8x128xi32>
    %10 = arith.cmpi sge, %8, %9 : vector<8x128xi32>
    %c96_i32 = arith.constant 96 : i32
    %11 = vector.broadcast %c96_i32 : i32 to vector<8x128xi32>
    %12 = arith.cmpi slt, %8, %11 : vector<8x128xi32>
    %13 = arith.andi %10, %12 : vector<8x128xi1>
    %cst_9 = arith.constant 0.000000e+00 : f32
    %14 = vector.broadcast %cst_9 : f32 to vector<8x32xf32>
    %cst_10 = arith.constant 0.000000e+00 : f32
    %15 = vector.broadcast %cst_10 : f32 to vector<8x32xf32>
    %c0_i32 = arith.constant 0 : i32
    %c8_i32 = arith.constant 8 : i32
    %16 = arith.muli %c0_i32, %c8_i32 : i32
    %17 = tpu.assume_multiple %16, 8 : i32
    %18 = arith.index_cast %17 : i32 to index
    %c0_11 = arith.constant 0 : index
    %19 = vector.load %arg8[%18, %c0_11] : memref<64x128xf32, #tpu.memory_space<vmem>>, vector<8x128xf32>
    %cst_12 = arith.constant dense<0.000000e+00> : vector<8x128xf32>
    %20 = tpu.matmul %14, %7, %cst_12 {dimension_numbers = #tpu.dot_dimension_numbers<[1], [0], [0], [1], [0, 0, 1, 1], [], []>} : vector<8x32xf32>, vector<32x128xf32>, vector<8x128xf32> -> vector<8x128xf32>
    %21 = arith.addf %19, %20 : vector<8x128xf32>
    %cst_13 = arith.constant 5.000000e-01 : f32
    %22 = vector.broadcast %cst_13 : f32 to vector<8x128xf32>
    %23 = arith.mulf %22, %21 : vector<8x128xf32>
    %24 = arith.select %13, %21, %23 : vector<8x128xi1>, vector<8x128xf32>
    %25 = math.tanh %24 : vector<8x128xf32>
    %cst_14 = arith.constant 5.000000e-01 : f32
    %26 = vector.broadcast %cst_14 : f32 to vector<8x128xf32>
    %27 = arith.mulf %26, %25 : vector<8x128xf32>
    %cst_15 = arith.constant 5.000000e-01 : f32
    %28 = vector.broadcast %cst_15 : f32 to vector<8x128xf32>
    %29 = arith.addf %27, %28 : vector<8x128xf32>
    %30 = arith.select %13, %25, %29 : vector<8x128xi1>, vector<8x128xf32>
    %31 = vector.extract_strided_slice %30 {offsets = [0, 0], sizes = [8, 32], strides = [1, 1]} : vector<8x128xf32> to vector<8x32xf32>
    %32 = vector.extract_strided_slice %30 {offsets = [0, 32], sizes = [8, 32], strides = [1, 1]} : vector<8x128xf32> to vector<8x32xf32>
    %33 = vector.extract_strided_slice %30 {offsets = [0, 64], sizes = [8, 32], strides = [1, 1]} : vector<8x128xf32> to vector<8x32xf32>
    %34 = vector.extract_strided_slice %30 {offsets = [0, 96], sizes = [8, 32], strides = [1, 1]} : vector<8x128xf32> to vector<8x32xf32>
    %35 = arith.mulf %32, %15 : vector<8x32xf32>
    %36 = arith.mulf %31, %33 : vector<8x32xf32>
    %37 = arith.addf %35, %36 : vector<8x32xf32>
    %38 = math.tanh %37 : vector<8x32xf32>
    %39 = arith.mulf %34, %38 : vector<8x32xf32>
    %40 = arith.index_cast %17 : i32 to index
    %c0_16 = arith.constant 0 : index
    %41 = vector.load %arg9[%40, %c0_16] : memref<64x32xf32, #tpu.memory_space<vmem>>, vector<8x32xf32>
    tpu.vector_store %arg9[%40, %c0_16], %39 {strides = array<i32>} : memref<64x32xf32, #tpu.memory_space<vmem>>, vector<8x32xf32>,
    %c1_i32 = arith.constant 1 : i32
    %c8_i32_17 = arith.constant 8 : i32
    %42 = arith.muli %c1_i32, %c8_i32_17 : i32
    %43 = tpu.assume_multiple %42, 8 : i32
    %44 = arith.index_cast %43 : i32 to index
    %c0_18 = arith.constant 0 : index
    %45 = vector.load %arg8[%44, %c0_18] : memref<64x128xf32, #tpu.memory_space<vmem>>, vector<8x128xf32>
    %cst_19 = arith.constant dense<0.000000e+00> : vector<8x128xf32>
    %46 = tpu.matmul %39, %7, %cst_19 {dimension_numbers = #tpu.dot_dimension_numbers<[1], [0], [0], [1], [0, 0, 1, 1], [], []>} : vector<8x32xf32>, vector<32x128xf32>, vector<8x128xf32> -> vector<8x128xf32>
    %47 = arith.addf %45, %46 : vector<8x128xf32>
    %cst_20 = arith.constant 5.000000e-01 : f32
    %48 = vector.broadcast %cst_20 : f32 to vector<8x128xf32>
    %49 = arith.mulf %48, %47 : vector<8x128xf32>
    %50 = arith.select %13, %47, %49 : vector<8x128xi1>, vector<8x128xf32>
    %51 = math.tanh %50 : vector<8x128xf32>
    %cst_21 = arith.constant 5.000000e-01 : f32
    %52 = vector.broadcast %cst_21 : f32 to vector<8x128xf32>
    %53 = arith.mulf %52, %51 : vector<8x128xf32>
    %cst_22 = arith.constant 5.000000e-01 : f32
    %54 = vector.broadcast %cst_22 : f32 to vector<8x128xf32>
    %55 = arith.addf %53, %54 : vector<8x128xf32>
    %56 = arith.select %13, %51, %55 : vector<8x128xi1>, vector<8x128xf32>
    %57 = vector.extract_strided_slice %56 {offsets = [0, 0], sizes = [8, 32], strides = [1, 1]} : vector<8x128xf32> to vector<8x32xf32>
    %58 = vector.extract_strided_slice %56 {offsets = [0, 32], sizes = [8, 32], strides = [1, 1]} : vector<8x128xf32> to vector<8x32xf32>
    %59 = vector.extract_strided_slice %56 {offsets = [0, 64], sizes = [8, 32], strides = [1, 1]} : vector<8x128xf32> to vector<8x32xf32>
    %60 = vector.extract_strided_slice %56 {offsets = [0, 96], sizes = [8, 32], strides = [1, 1]} : vector<8x128xf32> to vector<8x32xf32>
    %61 = arith.mulf %58, %37 : vector<8x32xf32>
    %62 = arith.mulf %57, %59 : vector<8x32xf32>
    %63 = arith.addf %61, %62 : vector<8x32xf32>
    %64 = math.tanh %63 : vector<8x32xf32>
    %65 = arith.mulf %60, %64 : vector<8x32xf32>
    %66 = arith.index_cast %43 : i32 to index
    %c0_23 = arith.constant 0 : index
    %67 = vector.load %arg9[%66, %c0_23] : memref<64x32xf32, #tpu.memory_space<vmem>>, vector<8x32xf32>
    tpu.vector_store %arg9[%66, %c0_23], %65 {strides = array<i32>} : memref<64x32xf32, #tpu.memory_space<vmem>>, vector<8x32xf32>,
    %c2_i32 = arith.constant 2 : i32
    %c8_i32_24 = arith.constant 8 : i32
    %68 = arith.muli %c2_i32, %c8_i32_24 : i32
    %69 = tpu.assume_multiple %68, 8 : i32
    %70 = arith.index_cast %69 : i32 to index
    %c0_25 = arith.constant 0 : index
    %71 = vector.load %arg8[%70, %c0_25] : memref<64x128xf32, #tpu.memory_space<vmem>>, vector<8x128xf32>
    %cst_26 = arith.constant dense<0.000000e+00> : vector<8x128xf32>
    %72 = tpu.matmul %65, %7, %cst_26 {dimension_numbers = #tpu.dot_dimension_numbers<[1], [0], [0], [1], [0, 0, 1, 1], [], []>} : vector<8x32xf32>, vector<32x128xf32>, vector<8x128xf32> -> vector<8x128xf32>
    %73 = arith.addf %71, %72 : vector<8x128xf32>
    %cst_27 = arith.constant 5.000000e-01 : f32
    %74 = vector.broadcast %cst_27 : f32 to vector<8x128xf32>
    %75 = arith.mulf %74, %73 : vector<8x128xf32>
    %76 = arith.select %13, %73, %75 : vector<8x128xi1>, vector<8x128xf32>
    %77 = math.tanh %76 : vector<8x128xf32>
    %cst_28 = arith.constant 5.000000e-01 : f32
    %78 = vector.broadcast %cst_28 : f32 to vector<8x128xf32>
    %79 = arith.mulf %78, %77 : vector<8x128xf32>
    %cst_29 = arith.constant 5.000000e-01 : f32
    %80 = vector.broadcast %cst_29 : f32 to vector<8x128xf32>
    %81 = arith.addf %79, %80 : vector<8x128xf32>
    %82 = arith.select %13, %77, %81 : vector<8x128xi1>, vector<8x128xf32>
    %83 = vector.extract_strided_slice %82 {offsets = [0, 0], sizes = [8, 32], strides = [1, 1]} : vector<8x128xf32> to vector<8x32xf32>
    %84 = vector.extract_strided_slice %82 {offsets = [0, 32], sizes = [8, 32], strides = [1, 1]} : vector<8x128xf32> to vector<8x32xf32>
    %85 = vector.extract_strided_slice %82 {offsets = [0, 64], sizes = [8, 32], strides = [1, 1]} : vector<8x128xf32> to vector<8x32xf32>
    %86 = vector.extract_strided_slice %82 {offsets = [0, 96], sizes = [8, 32], strides = [1, 1]} : vector<8x128xf32> to vector<8x32xf32>
    %87 = arith.mulf %84, %63 : vector<8x32xf32>
    %88 = arith.mulf %83, %85 : vector<8x32xf32>
    %89 = arith.addf %87, %88 : vector<8x32xf32>
    %90 = math.tanh %89 : vector<8x32xf32>
    %91 = arith.mulf %86, %90 : vector<8x32xf32>
    %92 = arith.index_cast %69 : i32 to index
    %c0_30 = arith.constant 0 : index
    %93 = vector.load %arg9[%92, %c0_30] : memref<64x32xf32, #tpu.memory_space<vmem>>, vector<8x32xf32>
    tpu.vector_store %arg9[%92, %c0_30], %91 {strides = array<i32>} : memref<64x32xf32, #tpu.memory_space<vmem>>, vector<8x32xf32>,
    %c3_i32 = arith.constant 3 : i32
    %c8_i32_31 = arith.constant 8 : i32
    %94 = arith.muli %c3_i32, %c8_i32_31 : i32
    %95 = tpu.assume_multiple %94, 8 : i32
    %96 = arith.index_cast %95 : i32 to index
    %c0_32 = arith.constant 0 : index
    %97 = vector.load %arg8[%96, %c0_32] : memref<64x128xf32, #tpu.memory_space<vmem>>, vector<8x128xf32>
    %cst_33 = arith.constant dense<0.000000e+00> : vector<8x128xf32>
    %98 = tpu.matmul %91, %7, %cst_33 {dimension_numbers = #tpu.dot_dimension_numbers<[1], [0], [0], [1], [0, 0, 1, 1], [], []>} : vector<8x32xf32>, vector<32x128xf32>, vector<8x128xf32> -> vector<8x128xf32>
    %99 = arith.addf %97, %98 : vector<8x128xf32>
    %cst_34 = arith.constant 5.000000e-01 : f32
    %100 = vector.broadcast %cst_34 : f32 to vector<8x128xf32>
    %101 = arith.mulf %100, %99 : vector<8x128xf32>
    %102 = arith.select %13, %99, %101 : vector<8x128xi1>, vector<8x128xf32>
    %103 = math.tanh %102 : vector<8x128xf32>
    %cst_35 = arith.constant 5.000000e-01 : f32
    %104 = vector.broadcast %cst_35 : f32 to vector<8x128xf32>
    %105 = arith.mulf %104, %103 : vector<8x128xf32>
    %cst_36 = arith.constant 5.000000e-01 : f32
    %106 = vector.broadcast %cst_36 : f32 to vector<8x128xf32>
    %107 = arith.addf %105, %106 : vector<8x128xf32>
    %108 = arith.select %13, %103, %107 : vector<8x128xi1>, vector<8x128xf32>
    %109 = vector.extract_strided_slice %108 {offsets = [0, 0], sizes = [8, 32], strides = [1, 1]} : vector<8x128xf32> to vector<8x32xf32>
    %110 = vector.extract_strided_slice %108 {offsets = [0, 32], sizes = [8, 32], strides = [1, 1]} : vector<8x128xf32> to vector<8x32xf32>
    %111 = vector.extract_strided_slice %108 {offsets = [0, 64], sizes = [8, 32], strides = [1, 1]} : vector<8x128xf32> to vector<8x32xf32>
    %112 = vector.extract_strided_slice %108 {offsets = [0, 96], sizes = [8, 32], strides = [1, 1]} : vector<8x128xf32> to vector<8x32xf32>
    %113 = arith.mulf %110, %89 : vector<8x32xf32>
    %114 = arith.mulf %109, %111 : vector<8x32xf32>
    %115 = arith.addf %113, %114 : vector<8x32xf32>
    %116 = math.tanh %115 : vector<8x32xf32>
    %117 = arith.mulf %112, %116 : vector<8x32xf32>
    %118 = arith.index_cast %95 : i32 to index
    %c0_37 = arith.constant 0 : index
    %119 = vector.load %arg9[%118, %c0_37] : memref<64x32xf32, #tpu.memory_space<vmem>>, vector<8x32xf32>
    tpu.vector_store %arg9[%118, %c0_37], %117 {strides = array<i32>} : memref<64x32xf32, #tpu.memory_space<vmem>>, vector<8x32xf32>,
    %c4_i32 = arith.constant 4 : i32
    %c8_i32_38 = arith.constant 8 : i32
    %120 = arith.muli %c4_i32, %c8_i32_38 : i32
    %121 = tpu.assume_multiple %120, 8 : i32
    %122 = arith.index_cast %121 : i32 to index
    %c0_39 = arith.constant 0 : index
    %123 = vector.load %arg8[%122, %c0_39] : memref<64x128xf32, #tpu.memory_space<vmem>>, vector<8x128xf32>
    %cst_40 = arith.constant dense<0.000000e+00> : vector<8x128xf32>
    %124 = tpu.matmul %117, %7, %cst_40 {dimension_numbers = #tpu.dot_dimension_numbers<[1], [0], [0], [1], [0, 0, 1, 1], [], []>} : vector<8x32xf32>, vector<32x128xf32>, vector<8x128xf32> -> vector<8x128xf32>
    %125 = arith.addf %123, %124 : vector<8x128xf32>
    %cst_41 = arith.constant 5.000000e-01 : f32
    %126 = vector.broadcast %cst_41 : f32 to vector<8x128xf32>
    %127 = arith.mulf %126, %125 : vector<8x128xf32>
    %128 = arith.select %13, %125, %127 : vector<8x128xi1>, vector<8x128xf32>
    %129 = math.tanh %128 : vector<8x128xf32>
    %cst_42 = arith.constant 5.000000e-01 : f32
    %130 = vector.broadcast %cst_42 : f32 to vector<8x128xf32>
    %131 = arith.mulf %130, %129 : vector<8x128xf32>
    %cst_43 = arith.constant 5.000000e-01 : f32
    %132 = vector.broadcast %cst_43 : f32 to vector<8x128xf32>
    %133 = arith.addf %131, %132 : vector<8x128xf32>
    %134 = arith.select %13, %129, %133 : vector<8x128xi1>, vector<8x128xf32>
    %135 = vector.extract_strided_slice %134 {offsets = [0, 0], sizes = [8, 32], strides = [1, 1]} : vector<8x128xf32> to vector<8x32xf32>
    %136 = vector.extract_strided_slice %134 {offsets = [0, 32], sizes = [8, 32], strides = [1, 1]} : vector<8x128xf32> to vector<8x32xf32>
    %137 = vector.extract_strided_slice %134 {offsets = [0, 64], sizes = [8, 32], strides = [1, 1]} : vector<8x128xf32> to vector<8x32xf32>
    %138 = vector.extract_strided_slice %134 {offsets = [0, 96], sizes = [8, 32], strides = [1, 1]} : vector<8x128xf32> to vector<8x32xf32>
    %139 = arith.mulf %136, %115 : vector<8x32xf32>
    %140 = arith.mulf %135, %137 : vector<8x32xf32>
    %141 = arith.addf %139, %140 : vector<8x32xf32>
    %142 = math.tanh %141 : vector<8x32xf32>
    %143 = arith.mulf %138, %142 : vector<8x32xf32>
    %144 = arith.index_cast %121 : i32 to index
    %c0_44 = arith.constant 0 : index
    %145 = vector.load %arg9[%144, %c0_44] : memref<64x32xf32, #tpu.memory_space<vmem>>, vector<8x32xf32>
    tpu.vector_store %arg9[%144, %c0_44], %143 {strides = array<i32>} : memref<64x32xf32, #tpu.memory_space<vmem>>, vector<8x32xf32>,
    %c5_i32 = arith.constant 5 : i32
    %c8_i32_45 = arith.constant 8 : i32
    %146 = arith.muli %c5_i32, %c8_i32_45 : i32
    %147 = tpu.assume_multiple %146, 8 : i32
    %148 = arith.index_cast %147 : i32 to index
    %c0_46 = arith.constant 0 : index
    %149 = vector.load %arg8[%148, %c0_46] : memref<64x128xf32, #tpu.memory_space<vmem>>, vector<8x128xf32>
    %cst_47 = arith.constant dense<0.000000e+00> : vector<8x128xf32>
    %150 = tpu.matmul %143, %7, %cst_47 {dimension_numbers = #tpu.dot_dimension_numbers<[1], [0], [0], [1], [0, 0, 1, 1], [], []>} : vector<8x32xf32>, vector<32x128xf32>, vector<8x128xf32> -> vector<8x128xf32>
    %151 = arith.addf %149, %150 : vector<8x128xf32>
    %cst_48 = arith.constant 5.000000e-01 : f32
    %152 = vector.broadcast %cst_48 : f32 to vector<8x128xf32>
    %153 = arith.mulf %152, %151 : vector<8x128xf32>
    %154 = arith.select %13, %151, %153 : vector<8x128xi1>, vector<8x128xf32>
    %155 = math.tanh %154 : vector<8x128xf32>
    %cst_49 = arith.constant 5.000000e-01 : f32
    %156 = vector.broadcast %cst_49 : f32 to vector<8x128xf32>
    %157 = arith.mulf %156, %155 : vector<8x128xf32>
    %cst_50 = arith.constant 5.000000e-01 : f32
    %158 = vector.broadcast %cst_50 : f32 to vector<8x128xf32>
    %159 = arith.addf %157, %158 : vector<8x128xf32>
    %160 = arith.select %13, %155, %159 : vector<8x128xi1>, vector<8x128xf32>
    %161 = vector.extract_strided_slice %160 {offsets = [0, 0], sizes = [8, 32], strides = [1, 1]} : vector<8x128xf32> to vector<8x32xf32>
    %162 = vector.extract_strided_slice %160 {offsets = [0, 32], sizes = [8, 32], strides = [1, 1]} : vector<8x128xf32> to vector<8x32xf32>
    %163 = vector.extract_strided_slice %160 {offsets = [0, 64], sizes = [8, 32], strides = [1, 1]} : vector<8x128xf32> to vector<8x32xf32>
    %164 = vector.extract_strided_slice %160 {offsets = [0, 96], sizes = [8, 32], strides = [1, 1]} : vector<8x128xf32> to vector<8x32xf32>
    %165 = arith.mulf %162, %141 : vector<8x32xf32>
    %166 = arith.mulf %161, %163 : vector<8x32xf32>
    %167 = arith.addf %165, %166 : vector<8x32xf32>
    %168 = math.tanh %167 : vector<8x32xf32>
    %169 = arith.mulf %164, %168 : vector<8x32xf32>
    %170 = arith.index_cast %147 : i32 to index
    %c0_51 = arith.constant 0 : index
    %171 = vector.load %arg9[%170, %c0_51] : memref<64x32xf32, #tpu.memory_space<vmem>>, vector<8x32xf32>
    tpu.vector_store %arg9[%170, %c0_51], %169 {strides = array<i32>} : memref<64x32xf32, #tpu.memory_space<vmem>>, vector<8x32xf32>,
    %c6_i32 = arith.constant 6 : i32
    %c8_i32_52 = arith.constant 8 : i32
    %172 = arith.muli %c6_i32, %c8_i32_52 : i32
    %173 = tpu.assume_multiple %172, 8 : i32
    %174 = arith.index_cast %173 : i32 to index
    %c0_53 = arith.constant 0 : index
    %175 = vector.load %arg8[%174, %c0_53] : memref<64x128xf32, #tpu.memory_space<vmem>>, vector<8x128xf32>
    %cst_54 = arith.constant dense<0.000000e+00> : vector<8x128xf32>
    %176 = tpu.matmul %169, %7, %cst_54 {dimension_numbers = #tpu.dot_dimension_numbers<[1], [0], [0], [1], [0, 0, 1, 1], [], []>} : vector<8x32xf32>, vector<32x128xf32>, vector<8x128xf32> -> vector<8x128xf32>
    %177 = arith.addf %175, %176 : vector<8x128xf32>
    %cst_55 = arith.constant 5.000000e-01 : f32
    %178 = vector.broadcast %cst_55 : f32 to vector<8x128xf32>
    %179 = arith.mulf %178, %177 : vector<8x128xf32>
    %180 = arith.select %13, %177, %179 : vector<8x128xi1>, vector<8x128xf32>
    %181 = math.tanh %180 : vector<8x128xf32>
    %cst_56 = arith.constant 5.000000e-01 : f32
    %182 = vector.broadcast %cst_56 : f32 to vector<8x128xf32>
    %183 = arith.mulf %182, %181 : vector<8x128xf32>
    %cst_57 = arith.constant 5.000000e-01 : f32
    %184 = vector.broadcast %cst_57 : f32 to vector<8x128xf32>
    %185 = arith.addf %183, %184 : vector<8x128xf32>
    %186 = arith.select %13, %181, %185 : vector<8x128xi1>, vector<8x128xf32>
    %187 = vector.extract_strided_slice %186 {offsets = [0, 0], sizes = [8, 32], strides = [1, 1]} : vector<8x128xf32> to vector<8x32xf32>
    %188 = vector.extract_strided_slice %186 {offsets = [0, 32], sizes = [8, 32], strides = [1, 1]} : vector<8x128xf32> to vector<8x32xf32>
    %189 = vector.extract_strided_slice %186 {offsets = [0, 64], sizes = [8, 32], strides = [1, 1]} : vector<8x128xf32> to vector<8x32xf32>
    %190 = vector.extract_strided_slice %186 {offsets = [0, 96], sizes = [8, 32], strides = [1, 1]} : vector<8x128xf32> to vector<8x32xf32>
    %191 = arith.mulf %188, %167 : vector<8x32xf32>
    %192 = arith.mulf %187, %189 : vector<8x32xf32>
    %193 = arith.addf %191, %192 : vector<8x32xf32>
    %194 = math.tanh %193 : vector<8x32xf32>
    %195 = arith.mulf %190, %194 : vector<8x32xf32>
    %196 = arith.index_cast %173 : i32 to index
    %c0_58 = arith.constant 0 : index
    %197 = vector.load %arg9[%196, %c0_58] : memref<64x32xf32, #tpu.memory_space<vmem>>, vector<8x32xf32>
    tpu.vector_store %arg9[%196, %c0_58], %195 {strides = array<i32>} : memref<64x32xf32, #tpu.memory_space<vmem>>, vector<8x32xf32>,
    %c7_i32 = arith.constant 7 : i32
    %c8_i32_59 = arith.constant 8 : i32
    %198 = arith.muli %c7_i32, %c8_i32_59 : i32
    %199 = tpu.assume_multiple %198, 8 : i32
    %200 = arith.index_cast %199 : i32 to index
    %c0_60 = arith.constant 0 : index
    %201 = vector.load %arg8[%200, %c0_60] : memref<64x128xf32, #tpu.memory_space<vmem>>, vector<8x128xf32>
    %cst_61 = arith.constant dense<0.000000e+00> : vector<8x128xf32>
    %202 = tpu.matmul %195, %7, %cst_61 {dimension_numbers = #tpu.dot_dimension_numbers<[1], [0], [0], [1], [0, 0, 1, 1], [], []>} : vector<8x32xf32>, vector<32x128xf32>, vector<8x128xf32> -> vector<8x128xf32>
    %203 = arith.addf %201, %202 : vector<8x128xf32>
    %cst_62 = arith.constant 5.000000e-01 : f32
    %204 = vector.broadcast %cst_62 : f32 to vector<8x128xf32>
    %205 = arith.mulf %204, %203 : vector<8x128xf32>
    %206 = arith.select %13, %203, %205 : vector<8x128xi1>, vector<8x128xf32>
    %207 = math.tanh %206 : vector<8x128xf32>
    %cst_63 = arith.constant 5.000000e-01 : f32
    %208 = vector.broadcast %cst_63 : f32 to vector<8x128xf32>
    %209 = arith.mulf %208, %207 : vector<8x128xf32>
    %cst_64 = arith.constant 5.000000e-01 : f32
    %210 = vector.broadcast %cst_64 : f32 to vector<8x128xf32>
    %211 = arith.addf %209, %210 : vector<8x128xf32>
    %212 = arith.select %13, %207, %211 : vector<8x128xi1>, vector<8x128xf32>
    %213 = vector.extract_strided_slice %212 {offsets = [0, 0], sizes = [8, 32], strides = [1, 1]} : vector<8x128xf32> to vector<8x32xf32>
    %214 = vector.extract_strided_slice %212 {offsets = [0, 32], sizes = [8, 32], strides = [1, 1]} : vector<8x128xf32> to vector<8x32xf32>
    %215 = vector.extract_strided_slice %212 {offsets = [0, 64], sizes = [8, 32], strides = [1, 1]} : vector<8x128xf32> to vector<8x32xf32>
    %216 = vector.extract_strided_slice %212 {offsets = [0, 96], sizes = [8, 32], strides = [1, 1]} : vector<8x128xf32> to vector<8x32xf32>
    %217 = arith.mulf %214, %193 : vector<8x32xf32>
    %218 = arith.mulf %213, %215 : vector<8x32xf32>
    %219 = arith.addf %217, %218 : vector<8x32xf32>
    %220 = math.tanh %219 : vector<8x32xf32>
    %221 = arith.mulf %216, %220 : vector<8x32xf32>
    %222 = arith.index_cast %199 : i32 to index
    %c0_65 = arith.constant 0 : index
    %223 = vector.load %arg9[%222, %c0_65] : memref<64x32xf32, #tpu.memory_space<vmem>>, vector<8x32xf32>
    tpu.vector_store %arg9[%222, %c0_65], %221 {strides = array<i32>} : memref<64x32xf32, #tpu.memory_space<vmem>>, vector<8x32xf32>,
    %c8_i32_66 = arith.constant 8 : i32
    %c0_67 = arith.constant 0 : index
    %c0_68 = arith.constant 0 : index
    %224 = vector.load %arg9[%c0_67, %c0_68] : memref<64x32xf32, #tpu.memory_space<vmem>>, vector<64x32xf32>
    %c0_i32_69 = arith.constant 0 : i32
    %c7_i32_70 = arith.constant 7 : i32
    %225 = arith.addi %c0_i32_69, %c7_i32_70 : i32
    %c1_i32_71 = arith.constant 1 : i32
    scf.for %arg10 = %c0_i32_69 to %225 step %c1_i32_71  : i32 {
      %c1_i32_73 = arith.constant 1 : i32
      %226 = arith.muli %arg10, %c1_i32_73 : i32
      %c0_i32_74 = arith.constant 0 : i32
      %227 = arith.addi %c0_i32_74, %226 : i32
      %c128_i32 = arith.constant 128 : i32
      %228 = arith.muli %227, %c128_i32 : i32
      %229 = tpu.assume_multiple %228, 128 : i32
      %c0_75 = arith.constant 0 : index
      %230 = arith.index_cast %229 : i32 to index
      %231 = vector.load %arg5[%c0_75, %230] : memref<32x896xf32, #tpu.memory_space<vmem>>, vector<32x128xf32>
      %cst_76 = arith.constant dense<0.000000e+00> : vector<64x128xf32>
      %232 = tpu.matmul %224, %231, %cst_76 {dimension_numbers = #tpu.dot_dimension_numbers<[1], [0], [0], [1], [0, 0, 1, 1], [], []>} : vector<64x32xf32>, vector<32x128xf32>, vector<64x128xf32> -> vector<64x128xf32>
      %c0_77 = arith.constant 0 : index
      %233 = arith.index_cast %229 : i32 to index
      %234 = vector.load %arg6[%c0_77, %233] : memref<1x896xf32, #tpu.memory_space<vmem>>, vector<1x128xf32>
      %235 = vector.broadcast %234 : vector<1x128xf32> to vector<64x128xf32>
      %236 = arith.addf %232, %235 : vector<64x128xf32>
      %c0_78 = arith.constant 0 : index
      %237 = arith.index_cast %229 : i32 to index
      %238 = vector.load %arg7[%c0_78, %237] : memref<64x896xf32, #tpu.memory_space<vmem>>, vector<64x128xf32>
      tpu.vector_store %arg7[%c0_78, %237], %236 {strides = array<i32>} : memref<64x896xf32, #tpu.memory_space<vmem>>, vector<64x128xf32>,
    }
    %c7_i32_72 = arith.constant 7 : i32
    return
  }
  func.func @transform_0(%arg0: i32) -> (i32, i32) {
    %c0_i32 = arith.constant 0 : i32
    %c0_i32_0 = arith.constant 0 : i32
    %c0_i32_1 = arith.constant 0 : i32
    return %c0_i32, %c0_i32_0 : i32, i32
  }
  func.func @transform_1(%arg0: i32) -> (i32, i32) {
    %c0_i32 = arith.constant 0 : i32
    %c0_i32_0 = arith.constant 0 : i32
    %c0_i32_1 = arith.constant 0 : i32
    return %c0_i32, %c0_i32_0 : i32, i32
  }
  func.func @transform_2(%arg0: i32) -> (i32, i32) {
    %c0_i32 = arith.constant 0 : i32
    %c0_i32_0 = arith.constant 0 : i32
    %c0_i32_1 = arith.constant 0 : i32
    return %c0_i32, %c0_i32_0 : i32, i32
  }
  func.func @transform_3(%arg0: i32) -> (i32, i32) {
    %c0_i32 = arith.constant 0 : i32
    %c0_i32_0 = arith.constant 0 : i32
    %c0_i32_1 = arith.constant 0 : i32
    return %c0_i32, %c0_i32_0 : i32, i32
  }
  func.func @transform_4(%arg0: i32) -> (i32, i32) {
    %c0_i32 = arith.constant 0 : i32
    %c0_i32_0 = arith.constant 0 : i32
    return %c0_i32, %arg0 : i32, i32
  }
  func.func @transform_5(%arg0: i32) -> (i32, i32) {
    %c0_i32 = arith.constant 0 : i32
    %c0_i32_0 = arith.constant 0 : i32
    return %c0_i32, %arg0 : i32, i32
  }
  func.func @transform_6(%arg0: i32) -> (i32, i32) {
    %c0_i32 = arith.constant 0 : i32
    %c0_i32_0 = arith.constant 0 : i32
    return %c0_i32, %arg0 : i32, i32
  }
}

</mosaic_0001>

<bundles_post_ra>
// kernel: tpu_custom_call.1
= control target key start
LH: loop header
LB: loop body
LE: loop exit
PB: predicated region body
PF: predicated region fallthrough
CT: control target
= control target key end

     0   :  { %11 = vsyncpa [#allocation5], 0  ;;  %s1994_s0 = inlined_call_operand.hbm [shape: f32[64,128], index: 0, kind: input, shape index: {}]   ;;  %s1995_s1 = inlined_call_operand.hbm [shape: f32[128,128], index: 1, kind: input, shape index: {}]   ;;  %s1996_s2 = inlined_call_operand.hbm [shape: f32[32,128], index: 2, kind: input, shape index: {}]   ;;  %s1997_s3 = inlined_call_operand.vmem [shape: f32[1,128], index: 3, kind: input, shape index: {}]   ;;  %s1998_s4 = inlined_call_operand.hbm [shape: f32[32,896], index: 4, kind: input, shape index: {}]   ;;  %s1999_s5 = inlined_call_operand.vmem [shape: f32[1,896], index: 5, kind: input, shape index: {}]   ;;  %s2000_s6 = inlined_call_operand.hbm [shape: f32[64,896], index: 6, kind: output, shape index: {}]  }
   0x1   :  { %12 = vsyncpa [#allocation8], 0 }
   0x2   :  { %13 = vsyncpa [#allocation11], 0 }
   0x3   :  { %14 = vsyncpa [#allocation6], 0  ;;  %s1688_s21 = smov [#allocation7]   ;;  %s1689_s23 = smov [#allocation4]  }
   0x4   :  { %s32_s22 = sshll.u32 %s1688_s21, 4  ;;  %s20_s24 = sshll.u32 %s1689_s23, 4  ;;  %s33_s22 = int_to_ptr.vmem [resolvable:$true] %s32_s22  ;;  %s21_s24 = int_to_ptr.vmem [resolvable:$true] %s20_s24 }
   0x5   :  { %s1580_s25 = scalar_lea.vmem %s33_s22, 2048  ;;  %p1585_p1 = scmp.lt.s32.totalorder %s33_s22, %s33_s22 }
   0x6   :  { %p1581_p0 = scmp.ne.s32.totalorder %s33_s22, %s1580_s25  ;;  %p1586_p2 = scmp.lt.s32.totalorder %s1580_s25, %s1580_s25 }
   0x8   :  { %p1587_p3 = por %p1586_p2, %p1585_p1 }
   0xa   :  { %p1588_p4 = pnand %p1587_p3, %p1581_p0 }
   0xc   :  { %1591 = shalt.err (!%p1588_p4)
}
   0xd   :  { %s1690_s26 = smov 128   ;;  %s1691_s27 = smov 8  }
   0xe   :  { %38 = dma.hbm_to_vmem [thread:$0]  %s1995_s1, 2048, %s33_s22, [#allocation8], %s1690_s26, %s1690_s26, %s1691_s27  }
   0xf   :  { %s1600_s30 = scalar_lea.vmem %s21_s24, 1024  ;;  %p1605_p6 = scmp.lt.s32.totalorder %s21_s24, %s21_s24 }
  0x10   :  { %p1601_p5 = scmp.ne.s32.totalorder %s21_s24, %s1600_s30  ;;  %p1606_p7 = scmp.lt.s32.totalorder %s1600_s30, %s1600_s30 }
  0x12   :  { %p1607_p8 = por %p1606_p7, %p1605_p6 }
  0x14   :  { %p1608_p9 = pnand %p1607_p8, %p1601_p5 }
  0x16   :  { %1611 = shalt.err (!%p1608_p9)
}
  0x17   :  { %26 = dma.hbm_to_vmem [thread:$0]  %s1994_s0, 1024, %s21_s24, [#allocation5], %s1690_s26, %s1690_s26, %s1691_s27  }
  0x18   :  { %s1692_s9 = smov [#allocation9]   ;;  %s1693_s11 = smov [#allocation10]  }
  0x19   :  { %s44_s10 = sshll.u32 %s1692_s9, 4  ;;  %s58_s12 = sshll.u32 %s1693_s11, 4  ;;  %s45_s10 = int_to_ptr.vmem [resolvable:$true] %s44_s10  ;;  %s59_s12 = int_to_ptr.vmem [resolvable:$true] %s58_s12 }
  0x1a   :  { %s1620_s13 = scalar_lea.vmem %s45_s10, 512  ;;  %p1625_p11 = scmp.lt.s32.totalorder %s45_s10, %s45_s10 }
  0x1b   :  { %p1621_p10 = scmp.ne.s32.totalorder %s45_s10, %s1620_s13  ;;  %p1626_p12 = scmp.lt.s32.totalorder %s1620_s13, %s1620_s13 }
  0x1d   :  { %p1627_p13 = por %p1626_p12, %p1625_p11 }
  0x1f   :  { %p1628_p0 = pnand %p1627_p13, %p1621_p10 }
  0x21   :  { %1631 = shalt.err (!%p1628_p0)
}
  0x22   :  { %50 = dma.hbm_to_vmem [thread:$0]  %s1996_s2, 512, %s45_s10, [#allocation8], %s1690_s26, %s1690_s26, %s1691_s27  }
  0x23   :  { %s1640_s15 = scalar_lea.vmem %s59_s12, 3584  ;;  %p1645_p2 = scmp.lt.s32.totalorder %s59_s12, %s59_s12 }
  0x24   :  { %p1641_p1 = scmp.ne.s32.totalorder %s59_s12, %s1640_s15  ;;  %p1646_p3 = scmp.lt.s32.totalorder %s1640_s15, %s1640_s15 }
  0x26   :  { %p1647_p4 = por %p1646_p3, %p1645_p2 }
  0x28   :  { %p1648_p5 = pnand %p1647_p4, %p1641_p1 }
  0x2a   :  { %1651 = shalt.err (!%p1648_p5)
}
  0x2b   :  { %s1694_s0 = smov 896   ;;  %s1695_s16 = smov 56  }
  0x2c   :  { %64 = dma.hbm_to_vmem [thread:$0]  %s1998_s4, 3584, %s59_s12, [#allocation11], %s1694_s0, %s1694_s0, %s1695_s16  }
  0x2d   :  { %1676 = dma.done.wait [#allocation5], 1024  }
  0x2e   :  { %1677 = vsyncadd [#allocation5], 4294966272 }
  0x2f   :  { %1678 = dma.done.wait [#allocation8], 2560  }
  0x30   :  { %1679 = vsyncadd [#allocation8], 4294964736 }
  0x31   :  { %1680 = dma.done.wait [#allocation11], 3584  }
  0x32   :  { %1681 = vsyncadd [#allocation11], 4294963712  ;;  %v1696_v0 = vmov 0.0   ;;  %vm1697_vm0 = vmmov 0   ;;  %v102_v1 = vld [vmem:[#allocation7 + $0x78] sm:$0xff]  ;;  %v101_v2 = vld [vmem:[#allocation7 + $0x70] sm:$0xff]  ;;  %v227_v25 = vlaneseq }
  0x33   :  { %1403 = vmatprep.subr.mxu1 %v1696_v0  ;;  %1411 = vmatprep.mubr.msk.f32.mxu1 %vm1697_vm0, %v1696_v0  ;;  %v100_v3 = vld [vmem:[#allocation7 + $0x68] sm:$0xff]  ;;  %v99_v4 = vld [vmem:[#allocation7 + $0x60] sm:$0xff]  ;;  %v1754_v5 = vld [vmem:[#allocation9 + $0x18] sm:$0xff]  ;;  %s1699_s19 = smov 32   ;;  %vm233_vm4 = vcmask 261120   ;;  %s1952_s20 = smov 0  }
  0x34   :  { %1359 = vmatprep.subr.mxu0 %v102_v1  ;;  %1404 = vmatpush3.msra.mxu1 %v1754_v5  ;;  %v1757_v6 = vld [vmem:[#allocation9 + $0x10] sm:$0xff]  ;;  %v98_v7 = vld [vmem:[#allocation7 + $0x58] sm:$0xff]  ;;  %v79_v8 = vld [vmem:[#allocation4] sm:$0xff]  ;;  %v228_v26 = vand.u32 127, %v227_v25 }
  0x35   :  { %1360 = vmatpush3.msra.mxu0 %v102_v1  ;;  %1405 = vmatprep.subr.mxu1 %v1696_v0  ;;  %v1761_v9 = vld [vmem:[#allocation9 + $0x8] sm:$0xff]  ;;  %v97_v10 = vld [vmem:[#allocation7 + $0x50] sm:$0xff]  ;;  %v1764_v11 = vld [vmem:[#allocation9] sm:$0xff] }
  0x36   :  { %1361 = vmatprep.subr.mxu0 %v101_v2  ;;  %1406 = vmatpush3.msra.mxu1 %v1757_v6  ;;  %v96_v12 = vld [vmem:[#allocation7 + $0x48] sm:$0xff]  ;;  %v95_v13 = vld [vmem:[#allocation7 + $0x40] sm:$0xff]  ;;  %v94_v14 = vld [vmem:[#allocation7 + $0x38] sm:$0xff]  ;;  %vm229_vm1 = vcmp.ge.s32.totalorder %v228_v26, 64  ;;  %vm230_vm2 = vcmp.lt.s32.totalorder %v228_v26, 96 }
  0x37   :  { %1362 = vmatpush3.msra.mxu0 %v101_v2  ;;  %1407 = vmatprep.subr.mxu1 %v1696_v0  ;;  %v93_v15 = vld [vmem:[#allocation7 + $0x30] sm:$0xff]  ;;  %v92_v16 = vld [vmem:[#allocation7 + $0x28] sm:$0xff]  ;;  %v91_v17 = vld [vmem:[#allocation7 + $0x20] sm:$0xff] }
  0x38   :  { %1363 = vmatprep.subr.mxu0 %v100_v3  ;;  %1391 = vmatprep.mubr.f32.mxu0 %v79_v8  ;;  %v90_v18 = vld [vmem:[#allocation7 + $0x18] sm:$0xff]  ;;  %v89_v19 = vld [vmem:[#allocation7 + $0x10] sm:$0xff]  ;;  %v88_v20 = vld [vmem:[#allocation7 + $0x8] sm:$0xff] }
  0x39   :  { %1364 = vmatpush3.msra.mxu0 %v100_v3  ;;  %1408 = vmatpush3.msra.mxu1 %v1761_v9  ;;  %v87_v21 = vld [vmem:[#allocation7] sm:$0xff]  ;;  %v80_v22 = vld [vmem:[#allocation4 + $0x8] sm:$0xff]  ;;  %vm1796_vm3 = vmand %vm229_vm1, %vm230_vm2 }
  0x3a   :  { %1365 = vmatprep.subr.mxu0 %v99_v4  ;;  %1409 = vmatprep.subr.mxu1 %v1696_v0  ;;  %v1793_v28 = vld [vmem:[%s1997_s3] ss:$0 sm:$0xff]  ;;  %s1698_s3 = smov 64   ;;  %v81_v1 = vld [vmem:[#allocation4 + $0x10] sm:$0xff]  ;;  %v82_v2 = vld [vmem:[#allocation4 + $0x18] sm:$0xff] }
  0x3b   :  { %1366 = vmatpush3.msra.mxu0 %v99_v4  ;;  %1410 = vmatpush3.msra.mxu1 %v1764_v11 }
  0x3c   :  { %1367 = vmatprep.subr.mxu0 %v98_v7  ;;  %1412 = vmatmul.mubr.f32.vlgmr.msra.gmra.mxu1 %v1696_v0 }
  0x3d   :  { %1368 = vmatpush3.msra.mxu0 %v98_v7  ;;  %1414 = vmatprep.subr.mxu1 %v1696_v0 }
  0x3e   :  { %1369 = vmatprep.subr.mxu0 %v97_v10  ;;  %1415 = vmatpush3.msra.mxu1 %v1754_v5 }
  0x3f   :  { %1370 = vmatpush3.msra.mxu0 %v97_v10  ;;  %1416 = vmatprep.subr.mxu1 %v1696_v0 }
  0x40   :  { %1371 = vmatprep.subr.mxu0 %v96_v12  ;;  %1417 = vmatpush3.msra.mxu1 %v1757_v6 }
  0x41   :  { %1372 = vmatpush3.msra.mxu0 %v96_v12  ;;  %1418 = vmatprep.subr.mxu1 %v1696_v0 }
  0x42   :  { %1373 = vmatprep.subr.mxu0 %v95_v13  ;;  %1419 = vmatpush3.msra.mxu1 %v1761_v9 }
  0x43   :  { %1374 = vmatpush3.msra.mxu0 %v95_v13  ;;  %1420 = vmatprep.subr.mxu1 %v1696_v0 }
  0x44   :  { %1375 = vmatprep.subr.mxu0 %v94_v14  ;;  %1421 = vmatpush3.msra.mxu1 %v1764_v11 }
  0x45   :  { %1376 = vmatpush3.msra.mxu0 %v94_v14  ;;  %1422 = vmatprep.mubr.msk.f32.mxu1 %vm1697_vm0, %v1696_v0 }
  0x46   :  { %1377 = vmatprep.subr.mxu0 %v93_v15  ;;  %1425 = vmatprep.subr.mxu1 %v1696_v0 }
  0x47   :  { %1378 = vmatpush3.msra.mxu0 %v93_v15 }
  0x48   :  { %1379 = vmatprep.subr.mxu0 %v92_v16 }
  0x49   :  { %1380 = vmatpush3.msra.mxu0 %v92_v16 }
  0x4a   :  { %1381 = vmatprep.subr.mxu0 %v91_v17 }
  0x4b   :  { %1382 = vmatpush3.msra.mxu0 %v91_v17 }
  0x4c   :  { %1383 = vmatprep.subr.mxu0 %v90_v18 }
  0x4d   :  { %1384 = vmatpush3.msra.mxu0 %v90_v18 }
  0x4e   :  { %1385 = vmatprep.subr.mxu0 %v89_v19 }
  0x4f   :  { %1386 = vmatpush3.msra.mxu0 %v89_v19 }
  0x50   :  { %1387 = vmatprep.subr.mxu0 %v88_v20 }
  0x51   :  { %1388 = vmatpush3.msra.mxu0 %v88_v20 }
  0x52   :  { %1389 = vmatprep.subr.mxu0 %v87_v21 }
  0x53   :  { %1390 = vmatpush3.msra.mxu0 %v87_v21 }
  0x54   :  { %1392 = vmatmul.mubr.f32.vlgmr.msra.gmra.mxu0 %v80_v22  ;;  %1458 = vmatprep.subr.mxu0 %v1696_v0 }
  0x55   :  { %1459 = vmatpush3.msra.mxu0 %v1754_v5  ;;  %1394 = vmatprep.mubr.f32.mxu0 %v81_v1 }
  0x56   :  { %1460 = vmatprep.subr.mxu0 %v1696_v0 }
  0x57   :  { %1461 = vmatpush3.msra.mxu0 %v1757_v6 }
  0x58   :  { %1462 = vmatprep.subr.mxu0 %v1696_v0  ;;  %1395 = vmatmul.mubr.f32.gmra.mxu0 %v82_v2 }
  0x59   :  { %1463 = vmatpush3.msra.mxu0 %v1761_v9 }
  0x5a   :  { %1464 = vmatprep.subr.mxu0 %v1696_v0 }
  0x5b   :  { %1465 = vmatpush3.msra.mxu0 %v1764_v11 }
  0x5c   :  { %1480 = vmatprep.subr.mxu0 %v1696_v0 }
  0xfc   :  { %v303_v23 = vpop.f32.mrf.mxu1 }
  0xfe   :  { %v1413_v24 = vpop.f32.mrf.mxu1 }
 0x114   :  { %v1393_v27 = vpop.f32.mrf.mxu0 }
 0x115   :  { %v182_v49 = vadd.f32 %v1393_v27, %v1793_v28 }
 0x116   :  { %v176_v29 = vpop.f32.mrf.mxu0 }
 0x117   :  { %v177_v30 = vadd.f32 %v1793_v28, %v176_v29 }
 0x118   :  { %v1396_v12 = vpop.f32.mrf.mxu0 }
 0x119   :  { %v307_v31 = vadd.f32 %v303_v23, %v177_v30 }
 0x11a   :  { %v186_v13 = vpop.f32.mrf.mxu0 }
 0x11b   :  { %v308_v33 = vmul.f32 0.5, %v307_v31  ;;  %v187_v14 = vadd.f32 %v1793_v28, %v186_v13 }
 0x11d   :  { %v309_v34 = vsel %vm1796_vm3, %v307_v31, %v308_v33 }
 0x11e   :  { %1540 = vtanh.f32 %v309_v34 }
 0x12b   :  { %v1541_v35 = vpop.eup %1540 }
 0x12c   :  { %v311_v36 = vmul.f32 0.5, %v1541_v35 }
 0x12e   :  { %v312_v37 = vadd.f32 0.5, %v311_v36  ;;  %v192_v36 = vadd.f32 %v1396_v12, %v1793_v28 }
 0x130   :  { %v313_v38 = vsel %vm1796_vm3, %v1541_v35, %v312_v37 }
 0x131   :  { %316 = vrot.lane.b32.xlu0 %v313_v38, %s1698_s3  ;;  %v314_v41 = vmul.f32 0.0, %v313_v38 }
 0x1a3   :  { %v317_v39 = vpop.permute.xlu0 %316 }
 0x1a4   :  { %v319_v40 = vmul.f32 %v317_v39, %v313_v38 }
 0x1a6   :  { %321 = vrot.lane.b32.xlu0 %v319_v40, %s1699_s19 }
 0x218   :  { %v322_v42 = vpop.permute.xlu0 %321 }
 0x219   :  { %v324_v43 = vadd.f32 %v322_v42, %v314_v41 }
 0x21b   :  { %1542 = vtanh.f32 %v324_v43 }
 0x228   :  { %v1543_v44 = vpop.eup %1542 }
 0x229   :  { %327 = vrot.lane.b32.xlu1 %v1543_v44, %s1698_s3 }
 0x29b   :  { %v328_v45 = vpop.permute.xlu1 %327 }
 0x29c   :  { %v330_v46 = vmul.f32 %v328_v45, %v313_v38 }
 0x29e   :  { %332 = vrot.lane.b32.xlu1 %v330_v46, %s1699_s19 }
 0x310   :  { %v333_v47 = vpop.permute.xlu1 %332 }
 0x311   :  { %335 = vst.msk [vmem:[#allocation3] sm:$0xff] %vm233_vm4, %v333_v47  ;;  %1423 = vmatmul.mubr.msk.f32.vlgmr.msra.gmra.mxu1 %vm233_vm4, %v333_v47 }
 0x312   :  { %1426 = vmatpush3.msra.mxu1 %v1754_v5  ;;  %1433 = vmatprep.mubr.msk.f32.mxu1 %vm1697_vm0, %v1696_v0 }
 0x313   :  { %1427 = vmatprep.subr.mxu1 %v1696_v0 }
 0x314   :  { %1428 = vmatpush3.msra.mxu1 %v1757_v6 }
 0x315   :  { %1429 = vmatprep.subr.mxu1 %v1696_v0 }
 0x316   :  { %1430 = vmatpush3.msra.mxu1 %v1761_v9 }
 0x317   :  { %1431 = vmatprep.subr.mxu1 %v1696_v0 }
 0x318   :  { %v1818_v48 = vld [vmem:[#allocation3] sm:$0xff]  ;;  %1432 = vmatpush3.msra.mxu1 %v1764_v11 }
 0x319   :  { %1436 = vmatprep.subr.mxu1 %v1696_v0 }
 0x3d1   :  { %v406_v50 = vpop.f32.mrf.mxu1 }
 0x3d2   :  { %v410_v51 = vadd.f32 %v406_v50, %v182_v49 }
 0x3d3   :  { %v1424_v52 = vpop.f32.mrf.mxu1 }
 0x3d4   :  { %v411_v53 = vmul.f32 0.5, %v410_v51  ;;  %v83_v52 = vld [vmem:[#allocation4 + $0x20] sm:$0xff] }
 0x3d5   :  { %1397 = vmatprep.mubr.f32.mxu0 %v83_v52 }
 0x3d6   :  { %v412_v54 = vsel %vm1796_vm3, %v410_v51, %v411_v53  ;;  %v84_v53 = vld [vmem:[#allocation4 + $0x28] sm:$0xff] }
 0x3d7   :  { %1544 = vtanh.f32 %v412_v54  ;;  %1398 = vmatmul.mubr.f32.gmra.mxu0 %v84_v53 }
 0x3e4   :  { %v1545_v55 = vpop.eup %1544 }
 0x3e5   :  { %v414_v56 = vmul.f32 0.5, %v1545_v55 }
 0x3e7   :  { %v415_v57 = vadd.f32 0.5, %v414_v56 }
 0x3e9   :  { %v416_v58 = vsel %vm1796_vm3, %v1545_v55, %v415_v57 }
 0x3ea   :  { %419 = vrot.lane.b32.xlu0 %v416_v58, %s1698_s3  ;;  %v417_v61 = vmul.f32 %v416_v58, %v324_v43 }
 0x45c   :  { %v420_v59 = vpop.permute.xlu0 %419 }
 0x45d   :  { %v422_v60 = vmul.f32 %v420_v59, %v416_v58 }
 0x45f   :  { %424 = vrot.lane.b32.xlu1 %v422_v60, %s1699_s19 }
 0x497   :  { %v1399_v59 = vpop.f32.mrf.mxu0 }
 0x499   :  { %v196_v60 = vpop.f32.mrf.mxu0 }
 0x4d1   :  { %v425_v62 = vpop.permute.xlu1 %424 }
 0x4d2   :  { %v427_v63 = vadd.f32 %v425_v62, %v417_v61  ;;  %v197_v61 = vadd.f32 %v1793_v28, %v196_v60 }
 0x4d4   :  { %1546 = vtanh.f32 %v427_v63 }
 0x4e1   :  { %v1547_v3 = vpop.eup %1546 }
 0x4e2   :  { %430 = vrot.lane.b32.xlu0 %v1547_v3, %s1698_s3 }
 0x554   :  { %v431_v4 = vpop.permute.xlu0 %430 }
 0x555   :  { %v433_v7 = vmul.f32 %v431_v4, %v416_v58 }
 0x557   :  { %435 = vrot.lane.b32.xlu1 %v433_v7, %s1699_s19 }
 0x5c9   :  { %v436_v8 = vpop.permute.xlu1 %435 }
 0x5ca   :  { %439 = vst.msk [vmem:[#allocation3 + $0x8] sm:$0xff] %vm233_vm4, %v436_v8  ;;  %1434 = vmatmul.mubr.msk.f32.vlgmr.msra.gmra.mxu1 %vm233_vm4, %v436_v8 }
 0x5cb   :  { %1437 = vmatpush3.msra.mxu1 %v1754_v5  ;;  %1444 = vmatprep.mubr.msk.f32.mxu1 %vm1697_vm0, %v1696_v0 }
 0x5cc   :  { %1438 = vmatprep.subr.mxu1 %v1696_v0 }
 0x5cd   :  { %1439 = vmatpush3.msra.mxu1 %v1757_v6 }
 0x5ce   :  { %1440 = vmatprep.subr.mxu1 %v1696_v0 }
 0x5cf   :  { %1441 = vmatpush3.msra.mxu1 %v1761_v9 }
 0x5d0   :  { %1442 = vmatprep.subr.mxu1 %v1696_v0 }
 0x5d1   :  { %v1841_v10 = vld [vmem:[#allocation3 + $0x8] sm:$0xff]  ;;  %1443 = vmatpush3.msra.mxu1 %v1764_v11 }
 0x5d2   :  { %1447 = vmatprep.subr.mxu1 %v1696_v0 }
 0x68a   :  { %v510_v15 = vpop.f32.mrf.mxu1 }
 0x68b   :  { %v514_v16 = vadd.f32 %v510_v15, %v187_v14 }
 0x68c   :  { %v1435_v17 = vpop.f32.mrf.mxu1 }
 0x68d   :  { %v515_v18 = vmul.f32 0.5, %v514_v16 }
 0x68f   :  { %v516_v19 = vsel %vm1796_vm3, %v514_v16, %v515_v18  ;;  %v85_v18 = vld [vmem:[#allocation4 + $0x30] sm:$0xff] }
 0x690   :  { %1548 = vtanh.f32 %v516_v19  ;;  %v86_v19 = vld [vmem:[#allocation4 + $0x38] sm:$0xff]  ;;  %1400 = vmatprep.mubr.f32.mxu0 %v85_v18 }
 0x691   :  { %1401 = vmatmul.mubr.f32.gmra.mxu0 %v86_v19 }
 0x692   :  { %1466 = vmatprep.mubr.msk.f32.mxu0 %vm1697_vm0, %v1696_v0 }
 0x69d   :  { %v1549_v20 = vpop.eup %1548 }
 0x69e   :  { %v518_v21 = vmul.f32 0.5, %v1549_v20 }
 0x6a0   :  { %v519_v22 = vadd.f32 0.5, %v518_v21 }
 0x6a2   :  { %v520_v23 = vsel %vm1796_vm3, %v1549_v20, %v519_v22 }
 0x6a3   :  { %523 = vrot.lane.b32.xlu0 %v520_v23, %s1698_s3  ;;  %v521_v26 = vmul.f32 %v520_v23, %v427_v63 }
 0x715   :  { %v524_v24 = vpop.permute.xlu0 %523 }
 0x716   :  { %v526_v25 = vmul.f32 %v524_v24, %v520_v23 }
 0x718   :  { %528 = vrot.lane.b32.xlu1 %v526_v25, %s1699_s19 }
 0x751   :  { %v1402_v25 = vpop.f32.mrf.mxu0 }
 0x78a   :  { %v529_v27 = vpop.permute.xlu1 %528 }
 0x78b   :  { %v531_v29 = vadd.f32 %v529_v27, %v521_v26  ;;  %v206_v26 = vpop.f32.mrf.mxu0 }
 0x78d   :  { %1550 = vtanh.f32 %v531_v29 }
 0x79a   :  { %v1551_v30 = vpop.eup %1550 }
 0x79b   :  { %534 = vrot.lane.b32.xlu0 %v1551_v30, %s1698_s3 }
 0x80d   :  { %v535_v31 = vpop.permute.xlu0 %534 }
 0x80e   :  { %v537_v33 = vmul.f32 %v535_v31, %v520_v23 }
 0x810   :  { %539 = vrot.lane.b32.xlu1 %v537_v33, %s1699_s19 }
 0x882   :  { %v540_v34 = vpop.permute.xlu1 %539 }
 0x883   :  { %543 = vst.msk [vmem:[#allocation3 + $0x10] sm:$0xff] %vm233_vm4, %v540_v34  ;;  %1445 = vmatmul.mubr.msk.f32.vlgmr.msra.gmra.mxu1 %vm233_vm4, %v540_v34 }
 0x884   :  { %1448 = vmatpush3.msra.mxu1 %v1754_v5  ;;  %1455 = vmatprep.mubr.msk.f32.mxu1 %vm1697_vm0, %v1696_v0 }
 0x885   :  { %1449 = vmatprep.subr.mxu1 %v1696_v0 }
 0x886   :  { %1450 = vmatpush3.msra.mxu1 %v1757_v6 }
 0x887   :  { %1451 = vmatprep.subr.mxu1 %v1696_v0 }
 0x888   :  { %1452 = vmatpush3.msra.mxu1 %v1761_v9 }
 0x889   :  { %1453 = vmatprep.subr.mxu1 %v1696_v0 }
 0x88a   :  { %v1864_v35 = vld [vmem:[#allocation3 + $0x10] sm:$0xff]  ;;  %1454 = vmatpush3.msra.mxu1 %v1764_v11 }
 0x88b   :  { %1469 = vmatprep.subr.mxu1 %v1696_v0 }
 0x943   :  { %v614_v37 = vpop.f32.mrf.mxu1 }
 0x944   :  { %v618_v38 = vadd.f32 %v614_v37, %v192_v36 }
 0x945   :  { %v1446_v39 = vpop.f32.mrf.mxu1 }
 0x946   :  { %v619_v40 = vmul.f32 0.5, %v618_v38 }
 0x948   :  { %v620_v41 = vsel %vm1796_vm3, %v618_v38, %v619_v40 }
 0x949   :  { %1552 = vtanh.f32 %v620_v41 }
 0x956   :  { %v1553_v42 = vpop.eup %1552 }
 0x957   :  { %v622_v43 = vmul.f32 0.5, %v1553_v42 }
 0x959   :  { %v623_v44 = vadd.f32 0.5, %v622_v43 }
 0x95b   :  { %v624_v45 = vsel %vm1796_vm3, %v1553_v42, %v623_v44 }
 0x95c   :  { %627 = vrot.lane.b32.xlu0 %v624_v45, %s1698_s3  ;;  %v625_v49 = vmul.f32 %v624_v45, %v531_v29 }
 0x9ce   :  { %v628_v46 = vpop.permute.xlu0 %627 }
 0x9cf   :  { %v630_v47 = vmul.f32 %v628_v46, %v624_v45 }
 0x9d1   :  { %632 = vrot.lane.b32.xlu1 %v630_v47, %s1699_s19 }
 0xa43   :  { %v633_v50 = vpop.permute.xlu1 %632 }
 0xa44   :  { %v635_v51 = vadd.f32 %v633_v50, %v625_v49 }
 0xa46   :  { %1554 = vtanh.f32 %v635_v51 }
 0xa53   :  { %v1555_v54 = vpop.eup %1554 }
 0xa54   :  { %638 = vrot.lane.b32.xlu0 %v1555_v54, %s1698_s3 }
 0xac6   :  { %v639_v55 = vpop.permute.xlu0 %638 }
 0xac7   :  { %v641_v56 = vmul.f32 %v639_v55, %v624_v45  ;;  %v207_v45 = vadd.f32 %v1793_v28, %v206_v26 }
 0xac9   :  { %643 = vrot.lane.b32.xlu1 %v641_v56, %s1699_s19 }
 0xb3b   :  { %v644_v57 = vpop.permute.xlu1 %643 }
 0xb3c   :  { %647 = vst.msk [vmem:[#allocation3 + $0x18] sm:$0xff] %vm233_vm4, %v644_v57  ;;  %1456 = vmatmul.mubr.msk.f32.vlgmr.msra.gmra.mxu1 %vm233_vm4, %v644_v57 }
 0xb3d   :  { %1470 = vmatpush3.msra.mxu1 %v1754_v5  ;;  %1477 = vmatprep.mubr.msk.f32.mxu1 %vm1697_vm0, %v1696_v0 }
 0xb3e   :  { %1471 = vmatprep.subr.mxu1 %v1696_v0 }
 0xb3f   :  { %1472 = vmatpush3.msra.mxu1 %v1757_v6 }
 0xb40   :  { %1473 = vmatprep.subr.mxu1 %v1696_v0 }
 0xb41   :  { %1474 = vmatpush3.msra.mxu1 %v1761_v9 }
 0xb42   :  { %1475 = vmatprep.subr.mxu1 %v1696_v0 }
 0xb43   :  { %v1887_v58 = vld [vmem:[#allocation3 + $0x18] sm:$0xff]  ;;  %1476 = vmatpush3.msra.mxu1 %v1764_v11 }
 0xbfc   :  { %v718_v62 = vpop.f32.mrf.mxu1 }
 0xbfd   :  { %v722_v63 = vadd.f32 %v718_v62, %v197_v61 }
 0xbfe   :  { %v1457_v1 = vpop.f32.mrf.mxu1 }
 0xbff   :  { %v723_v2 = vmul.f32 0.5, %v722_v63 }
 0xc01   :  { %v724_v3 = vsel %vm1796_vm3, %v722_v63, %v723_v2 }
 0xc02   :  { %1556 = vtanh.f32 %v724_v3 }
 0xc0f   :  { %v1557_v4 = vpop.eup %1556 }
 0xc10   :  { %v726_v7 = vmul.f32 0.5, %v1557_v4 }
 0xc12   :  { %v727_v8 = vadd.f32 0.5, %v726_v7 }
 0xc14   :  { %v728_v12 = vsel %vm1796_vm3, %v1557_v4, %v727_v8  ;;  %v212_v4 = vadd.f32 %v1402_v25, %v1793_v28 }
 0xc15   :  { %731 = vrot.lane.b32.xlu0 %v728_v12, %s1698_s3  ;;  %v729_v15 = vmul.f32 %v728_v12, %v635_v51 }
 0xc87   :  { %v732_v13 = vpop.permute.xlu0 %731 }
 0xc88   :  { %v734_v14 = vmul.f32 %v732_v13, %v728_v12 }
 0xc8a   :  { %736 = vrot.lane.b32.xlu1 %v734_v14, %s1699_s19 }
 0xcfc   :  { %v737_v16 = vpop.permute.xlu1 %736 }
 0xcfd   :  { %v739_v17 = vadd.f32 %v737_v16, %v729_v15 }
 0xcff   :  { %1558 = vtanh.f32 %v739_v17 }
 0xd0c   :  { %v1559_v20 = vpop.eup %1558 }
 0xd0d   :  { %742 = vrot.lane.b32.xlu0 %v1559_v20, %s1698_s3 }
 0xd7f   :  { %v743_v21 = vpop.permute.xlu0 %742 }
 0xd80   :  { %v745_v22 = vmul.f32 %v743_v21, %v728_v12 }
 0xd82   :  { %747 = vrot.lane.b32.xlu1 %v745_v22, %s1699_s19 }
 0xdf4   :  { %v748_v23 = vpop.permute.xlu1 %747 }
 0xdf5   :  { %751 = vst.msk [vmem:[#allocation3 + $0x20] sm:$0xff] %vm233_vm4, %v748_v23  ;;  %1467 = vmatmul.mubr.msk.f32.vlgmr.msra.gmra.mxu0 %vm233_vm4, %v748_v23 }
 0xdf6   :  { %1481 = vmatpush3.msra.mxu0 %v1754_v5  ;;  %1488 = vmatprep.mubr.msk.f32.mxu0 %vm1697_vm0, %v1696_v0  ;;  %v202_v5 = vadd.f32 %v1399_v59, %v1793_v28 }
 0xdf7   :  { %1482 = vmatprep.subr.mxu0 %v1696_v0 }
 0xdf8   :  { %1483 = vmatpush3.msra.mxu0 %v1757_v6 }
 0xdf9   :  { %1484 = vmatprep.subr.mxu0 %v1696_v0 }
 0xdfa   :  { %1485 = vmatpush3.msra.mxu0 %v1761_v9 }
 0xdfb   :  { %1486 = vmatprep.subr.mxu0 %v1696_v0 }
 0xdfc   :  { %v1911_v24 = vld [vmem:[#allocation3 + $0x20] sm:$0xff]  ;;  %1487 = vmatpush3.msra.mxu0 %v1764_v11 }
 0xeb5   :  { %v822_v27 = vpop.f32.mrf.mxu0 }
 0xeb6   :  { %v826_v29 = vadd.f32 %v822_v27, %v202_v5 }
 0xeb7   :  { %v1468_v30 = vpop.f32.mrf.mxu0 }
 0xeb8   :  { %v827_v31 = vmul.f32 0.5, %v826_v29 }
 0xeba   :  { %v828_v6 = vsel %vm1796_vm3, %v826_v29, %v827_v31 }
 0xebb   :  { %1560 = vtanh.f32 %v828_v6 }
 0xec8   :  { %v1561_v33 = vpop.eup %1560 }
 0xec9   :  { %v830_v9 = vmul.f32 0.5, %v1561_v33 }
 0xecb   :  { %v831_v34 = vadd.f32 0.5, %v830_v9 }
 0xecd   :  { %v832_v0 = vsel %vm1796_vm3, %v1561_v33, %v831_v34 }
 0xece   :  { %835 = vrot.lane.b32.xlu0 %v832_v0, %s1698_s3  ;;  %v833_v37 = vmul.f32 %v832_v0, %v739_v17 }
 0xf40   :  { %v836_v11 = vpop.permute.xlu0 %835 }
 0xf41   :  { %v838_v36 = vmul.f32 %v836_v11, %v832_v0 }
 0xf43   :  { %840 = vrot.lane.b32.xlu1 %v838_v36, %s1699_s19 }
 0xfb5   :  { %v841_v38 = vpop.permute.xlu1 %840 }
 0xfb6   :  { %v843_v39 = vadd.f32 %v841_v38, %v833_v37 }
 0xfb8   :  { %1562 = vtanh.f32 %v843_v39 }
 0xfc5   :  { %v1563_v40 = vpop.eup %1562 }
 0xfc6   :  { %846 = vrot.lane.b32.xlu0 %v1563_v40, %s1698_s3 }
0x1038   :  { %v847_v41 = vpop.permute.xlu0 %846 }
0x1039   :  { %v849_v42 = vmul.f32 %v847_v41, %v832_v0 }
0x103b   :  { %851 = vrot.lane.b32.xlu1 %v849_v42, %s1699_s19 }
0x10ad   :  { %v852_v43 = vpop.permute.xlu1 %851 }
0x10ae   :  { %855 = vst.msk [vmem:[#allocation3 + $0x28] sm:$0xff] %vm233_vm4, %v852_v43  ;;  %1478 = vmatmul.mubr.msk.f32.vlgmr.msra.gmra.mxu1 %vm233_vm4, %v852_v43 }
0x10b5   :  { %v1925_v44 = vld [vmem:[#allocation3 + $0x28] sm:$0xff] }
0x116e   :  { %v926_v46 = vpop.f32.mrf.mxu1 }
0x116f   :  { %v930_v47 = vadd.f32 %v926_v46, %v207_v45 }
0x1170   :  { %v1479_v49 = vpop.f32.mrf.mxu1 }
0x1171   :  { %v931_v50 = vmul.f32 0.5, %v930_v47 }
0x1173   :  { %v932_v51 = vsel %vm1796_vm3, %v930_v47, %v931_v50 }
0x1174   :  { %1564 = vtanh.f32 %v932_v51 }
0x1181   :  { %v1565_v52 = vpop.eup %1564 }
0x1182   :  { %v934_v53 = vmul.f32 0.5, %v1565_v52 }
0x1184   :  { %v935_v54 = vadd.f32 0.5, %v934_v53 }
0x1186   :  { %v936_v55 = vsel %vm1796_vm3, %v1565_v52, %v935_v54 }
0x1187   :  { %939 = vrot.lane.b32.xlu0 %v936_v55, %s1698_s3  ;;  %v937_v59 = vmul.f32 %v936_v55, %v843_v39 }
0x11f9   :  { %v940_v56 = vpop.permute.xlu0 %939 }
0x11fa   :  { %v942_v57 = vmul.f32 %v940_v56, %v936_v55 }
0x11fc   :  { %944 = vrot.lane.b32.xlu1 %v942_v57, %s1699_s19 }
0x126e   :  { %v945_v60 = vpop.permute.xlu1 %944 }
0x126f   :  { %v947_v61 = vadd.f32 %v945_v60, %v937_v59 }
0x1271   :  { %1566 = vtanh.f32 %v947_v61 }
0x127e   :  { %v1567_v62 = vpop.eup %1566 }
0x127f   :  { %950 = vrot.lane.b32.xlu0 %v1567_v62, %s1698_s3 }
0x12f1   :  { %v951_v63 = vpop.permute.xlu0 %950 }
0x12f2   :  { %v953_v1 = vmul.f32 %v951_v63, %v936_v55 }
0x12f4   :  { %955 = vrot.lane.b32.xlu1 %v953_v1, %s1699_s19 }
0x1366   :  { %v956_v2 = vpop.permute.xlu1 %955 }
0x1367   :  { %959 = vst.msk [vmem:[#allocation3 + $0x30] sm:$0xff] %vm233_vm4, %v956_v2  ;;  %1489 = vmatmul.mubr.msk.f32.vlgmr.msra.gmra.mxu0 %vm233_vm4, %v956_v2 }
0x136e   :  { %v1938_v3 = vld [vmem:[#allocation3 + $0x30] sm:$0xff] }
0x1427   :  { %v1030_v7 = vpop.f32.mrf.mxu0 }
0x1428   :  { %v1034_v8 = vadd.f32 %v1030_v7, %v212_v4 }
0x1429   :  { %v1490_v12 = vpop.f32.mrf.mxu0 }
0x142a   :  { %v1035_v13 = vmul.f32 0.5, %v1034_v8 }
0x142c   :  { %v1036_v14 = vsel %vm1796_vm3, %v1034_v8, %v1035_v13 }
0x142d   :  { %1568 = vtanh.f32 %v1036_v14 }
0x143a   :  { %v1569_v15 = vpop.eup %1568 }
0x143b   :  { %v1038_v16 = vmul.f32 0.5, %v1569_v15 }
0x143d   :  { %v1039_v17 = vadd.f32 0.5, %v1038_v16 }
0x143f   :  { %v1040_v18 = vsel %vm1796_vm3, %v1569_v15, %v1039_v17 }
0x1440   :  { %1043 = vrot.lane.b32.xlu0 %v1040_v18, %s1698_s3  ;;  %v1041_v28 = vmul.f32 %v1040_v18, %v947_v61 }
0x14b2   :  { %v1044_v19 = vpop.permute.xlu0 %1043 }
0x14b3   :  { %v1046_v20 = vmul.f32 %v1044_v19, %v1040_v18 }
0x14b5   :  { %1048 = vrot.lane.b32.xlu1 %v1046_v20, %s1699_s19 }
0x1527   :  { %v1049_v21 = vpop.permute.xlu1 %1048 }
0x1528   :  { %v1051_v22 = vadd.f32 %v1049_v21, %v1041_v28 }
0x152a   :  { %1570 = vtanh.f32 %v1051_v22 }
0x1537   :  { %v1571_v23 = vpop.eup %1570 }
0x1538   :  { %1054 = vrot.lane.b32.xlu0 %v1571_v23, %s1698_s3 }
0x15aa   :  { %v1055_v25 = vpop.permute.xlu0 %1054 }
0x15ab   :  { %v1057_v26 = vmul.f32 %v1055_v25, %v1040_v18 }
0x15ad   :  { %1059 = vrot.lane.b32.xlu1 %v1057_v26, %s1699_s19 }
0x161f   :  { %v1060_v5 = vpop.permute.xlu1 %1059 }
0x1620   :  { %1063 = vst.msk [vmem:[#allocation3 + $0x38] sm:$0xff] %vm233_vm4, %v1060_v5 }
0x1627   :  { %v1950_v32 = vld [vmem:[#allocation3 + $0x38] sm:$0xff] }
0x1628 LB: > { %1499 = vmatprep.mubr.msk.f32.mxu0 %vm233_vm4, %v1818_v48  ;;  %1505 = vmatprep.mubr.msk.f32.mxu1 %vm233_vm4, %v1911_v24  ;;  %s1271_s21 = sshll.u32 %s1686_s20, 7  ;;  %s1077_s20 = sadd.s32 1, %s1686_s20   ;;  %s1686_s20 = sphi %s1952_s20, %s1077_s20  }
0x1629   : > { %s1962_s22 = sshra.s32 %s1271_s21, 7  ;;  %p1074_p6 = scmp.ge.s32.totalorder %s1077_s20, 7  }
0x162a   : > { %s1272_s23 = sshll.u32 %s1962_s22, 3  ;;  %s1087_s27 = scalar_lea.vmem %s1999_s5, %s1962_s22 }
0x162b   : > { %s1082_s24 = scalar_lea.vmem [#allocation10], %s1272_s23  ;;  %v1273_v6 = vld [vmem:[%s1087_s27] ss:$0 sm:$0xff]  ;;  %s1225_s28 = scalar_lea.vmem [#allocation12], %s1272_s23 }
0x162c   : > { %v1086_v27 = vld [vmem:[%s1082_s24 + $0xa8] sm:$0xff]  ;;  %v1085_v29 = vld [vmem:[%s1082_s24 + $0x70] sm:$0xff]  ;;  %v1084_v30 = vld [vmem:[%s1082_s24 + $0x38] sm:$0xff]  ;;  %s1700_s29 = smov (%p1074_p6), [#allocation12]  }
0x162d   : > { %1491 = vmatprep.subr.mxu0 %v1086_v27  ;;  %1511 = vmatprep.subr.mxu1 %v1086_v27  ;;  %v1083_v31 = vld [vmem:[%s1082_s24] sm:$0xff]  ;;  %s1239_s30 = sshll.u32 (%p1074_p6), %s1700_s29, 4  ;;  %s1240_s30 = int_to_ptr.vmem [resolvable:$true] %s1239_s30 }
0x162e   : > { %1492 = vmatpush3.msra.mxu0 %v1086_v27  ;;  %1515 = vmatpush3.msra.mxu1 %v1086_v27  ;;  %s1652_s7 = scalar_lea.vmem (%p1074_p6), %s1240_s30, 7168  ;;  %p1657_p8 = scmp.lt.s32.totalorder (%p1074_p6), %s1240_s30, %s1240_s30 }
0x162f   : > { %1493 = vmatprep.subr.mxu0 %v1085_v29  ;;  %1512 = vmatprep.subr.mxu1 %v1085_v29  ;;  %p1653_p7 = scmp.ne.s32.totalorder (%p1074_p6), %s1240_s30, %s1652_s7  ;;  %p1658_p9 = scmp.lt.s32.totalorder (%p1074_p6), %s1652_s7, %s1652_s7 }
0x1630   : > { %1494 = vmatpush3.msra.mxu0 %v1085_v29  ;;  %1516 = vmatpush3.msra.mxu1 %v1085_v29 }
0x1631   : > { %1495 = vmatprep.subr.mxu0 %v1084_v30  ;;  %1513 = vmatprep.subr.mxu1 %v1084_v30  ;;  %p1659_p10 = por (%p1074_p6), %p1658_p9, %p1657_p8 }
0x1632   : > { %1496 = vmatpush3.msra.mxu0 %v1084_v30  ;;  %1517 = vmatpush3.msra.mxu1 %v1084_v30 }
0x1633   : > { %1497 = vmatprep.subr.mxu0 %v1083_v31  ;;  %1514 = vmatprep.subr.mxu1 %v1083_v31  ;;  %p1660_p11 = pnand (%p1074_p6), %p1659_p10, %p1653_p7 }
0x1634   : > { %1498 = vmatpush3.msra.mxu0 %v1083_v31  ;;  %1518 = vmatpush3.msra.mxu1 %v1083_v31 }
0x1635   : > { %1500 = vmatmul.mubr.msk.f32.vlgmr.msra.gmra.mxu0 %vm233_vm4, %v1841_v10  ;;  %1506 = vmatmul.mubr.msk.f32.vlgmr.msra.gmra.mxu1 %vm233_vm4, %v1925_v44 }
0x1636   : > { %1502 = vmatprep.mubr.msk.f32.mxu0 %vm233_vm4, %v1864_v35  ;;  %1508 = vmatprep.mubr.msk.f32.mxu1 %vm233_vm4, %v1938_v3 }
0x1639   : > { %1503 = vmatmul.mubr.msk.f32.gmra.mxu0 %vm233_vm4, %v1887_v58  ;;  %1509 = vmatmul.mubr.msk.f32.gmra.mxu1 %vm233_vm4, %v1950_v32 }
0x16f5   : > { %v1501_v33 = vpop.f32.mrf.mxu0  ;;  %v1507_v9 = vpop.f32.mrf.mxu1 }
0x16f6   : > { %v1191_v34 = vadd.f32 %v1501_v33, %v1273_v6  ;;  %v1211_v0 = vadd.f32 %v1507_v9, %v1273_v6 }
0x16f7   : > { %v1185_v11 = vpop.f32.mrf.mxu0  ;;  %v1205_v36 = vpop.f32.mrf.mxu1 }
0x16f8   : > { %1227 = vst [vmem:[%s1225_s28 + $0x38] sm:$0xff] %v1191_v34  ;;  %1231 = vst [vmem:[%s1225_s28 + $0x118] sm:$0xff] %v1211_v0  ;;  %v1186_v37 = vadd.f32 %v1273_v6, %v1185_v11  ;;  %v1206_v38 = vadd.f32 %v1273_v6, %v1205_v36 }
0x16f9   : > { %v1504_v39 = vpop.f32.mrf.mxu0  ;;  %v1510_v40 = vpop.f32.mrf.mxu1 }
0x16fa   : > { %1226 = vst [vmem:[%s1225_s28] sm:$0xff] %v1186_v37  ;;  %1230 = vst [vmem:[%s1225_s28 + $0xe0] sm:$0xff] %v1206_v38  ;;  %v1201_v41 = vadd.f32 %v1504_v39, %v1273_v6  ;;  %v1221_v42 = vadd.f32 %v1510_v40, %v1273_v6  ;;  %1076 = sbr.rel (!%p1074_p6) target bundleno = 5672 (0x1628), region = 84 }
0x16fb   : > { %v1195_v43 = vpop.f32.mrf.mxu0  ;;  %v1215_v45 = vpop.f32.mrf.mxu1 }
0x16fc   : > { %1229 = vst [vmem:[%s1225_s28 + $0xa8] sm:$0xff] %v1201_v41  ;;  %1233 = vst [vmem:[%s1225_s28 + $0x188] sm:$0xff] %v1221_v42  ;;  %v1196_v46 = vadd.f32 %v1273_v6, %v1195_v43  ;;  %v1216_v47 = vadd.f32 %v1273_v6, %v1215_v45 }
0x16fe   : > { %1228 = vst [vmem:[%s1225_s28 + $0x70] sm:$0xff] %v1196_v46  ;;  %1232 = vst [vmem:[%s1225_s28 + $0x150] sm:$0xff] %v1216_v47 }
0x16ff   :  { %1663 = shalt.err (!%p1660_p11)
}
0x1700   :  { %1245 = dma.vmem_to_hbm [thread:$0]  %s1240_s30, 7168, %s2000_s6, [#allocation6], %s1694_s0, %s1694_s0, %s1695_s16  }
0x1701   :  { %1682 = dma.done.wait [#allocation6], 7168  }
0x1702   :  { %1683 = vsyncadd [#allocation6], 4294960128 }
0x1703   :  { %1249 = vsyncpa [#allocation5], 1 }
0x1704   :  { %1250 = vsyncpa [#allocation8], 1 }
0x1705   :  { %1251 = vsyncpa [#allocation11], 1 }
0x1706   :  { %1252 = vsyncpa [#allocation6], 1 }

</bundles_post_ra>
